<compile_context>
chip_gen: v7x
topology: tpu7x:2x2x1
jax: 0.10.0
libtpu: 0.0.40
codegen_flags: <defaults>
</compile_context>

<pallas_src>
import functools
import math

import jax
import jax.numpy as jnp
import numpy as np
from jax import lax
from jax.experimental import pallas as pl
from jax.experimental.pallas import tpu as pltpu

HIDDEN = 64          # per-branch hidden width
PACK = 2 * HIDDEN    # 128: fused hidden width and packed (lane-dense) output width


def _round_up(n, m):
    return ((n + m - 1) // m) * m


def _softplus(z):
    # numerically-stable softplus, matches torch.nn.functional.softplus
    return jnp.maximum(z, 0.0) + jnp.log1p(jnp.exp(-jnp.abs(z)))


# ----------------------------- kernel ----------------------------------------


def _fused_mlp_kernel(x_ref, w1_ref, w2_ref, wh_ref, b_ref, out_ref, *,
                      num_actions, dist_type):
    """[TB,S]@[S,128] -> tanh -> [TB,128]@[128,128] (block-diag) -> tanh
    -> [TB,128]@[128,128] (block-diag head).  Biases packed in one (8,128)."""
    x = x_ref[...]
    b1 = b_ref[0:1, :]
    b2 = b_ref[1:2, :]
    bh = b_ref[2:3, :]

    h = jnp.tanh(
        jnp.dot(x, w1_ref[...], preferred_element_type=jnp.float32) + b1)
    h = jnp.tanh(
        jnp.dot(h, w2_ref[...], preferred_element_type=jnp.float32) + b2)
    raw = jnp.dot(h, wh_ref[...], preferred_element_type=jnp.float32) + bh

    if dist_type == "beta":
        # softplus(.) + 1 only on the alpha/beta lanes (cols 1 .. 2A); value
        # lane (col 0) and padding lanes stay raw.  Pure VPU/EUP lane select.
        lane = lax.broadcasted_iota(jnp.int32, raw.shape, 1)
        act_mask = (lane >= 1) & (lane < 1 + 2 * num_actions)
        raw = jnp.where(act_mask, _softplus(raw) + 1.0, raw)

    out_ref[...] = raw


# ----------------------------- parameters ------------------------------------


def init_params(key, state_size, num_actions, dist_type):
    """Deterministic init mirroring nn.Linear default (U(-1/sqrt(fan_in), ..))
    plus the .mul_(0.1)/.zero_() edits in MLP_Net.__init__.
    Weights stored transposed: [in_features, out_features]."""
    ks = jax.random.split(key, 16)

    def linear(k, fan_in, fan_out):
        bound = 1.0 / np.sqrt(fan_in)
        kw, kb = jax.random.split(k)
        w = jax.random.uniform(kw, (fan_in, fan_out), jnp.float32, -bound, bound)
        b = jax.random.uniform(kb, (1, fan_out), jnp.float32, -bound, bound)
        return w, b

    p = {}
    p["w1_v"], p["b1_v"] = linear(ks[0], state_size, HIDDEN)
    p["w2_v"], p["b2_v"] = linear(ks[1], HIDDEN, HIDDEN)
    p["w1_a"], p["b1_a"] = linear(ks[2], state_size, HIDDEN)
    p["w2_a"], p["b2_a"] = linear(ks[3], HIDDEN, HIDDEN)

    wv, _ = linear(ks[4], HIDDEN, 1)
    p["w_val"] = wv * 0.1
    p["b_val"] = jnp.zeros((1, 1), jnp.float32)

    if dist_type == "gauss":
        wm, _ = linear(ks[5], HIDDEN, num_actions)
        p["w_mean"] = wm * 0.1
        p["b_mean"] = jnp.zeros((1, num_actions), jnp.float32)
        p["sigma_log"] = jnp.zeros((1, num_actions), jnp.float32)
    elif dist_type == "beta":
        wa, _ = linear(ks[6], HIDDEN, num_actions)
        wb, _ = linear(ks[7], HIDDEN, num_actions)
        p["w_alpha"] = wa * 0.1
        p["b_alpha"] = jnp.zeros((1, num_actions), jnp.float32)
        p["w_beta"] = wb * 0.1
        p["b_beta"] = jnp.zeros((1, num_actions), jnp.float32)
    else:
        raise ValueError(dist_type)
    return p


def pack_params(p, num_actions, dist_type):
    """One-time packing of both branches into 128-lane-wide fused operands.
    All three biases are packed into a single (8,128) block (rows 0..2)."""
    A = num_actions
    n_out = 1 + (A if dist_type == "gauss" else 2 * A)
    assert n_out <= PACK, "packed head exceeds 128 lanes"

    w1 = jnp.concatenate([p["w1_v"], p["w1_a"]], axis=1)          # [S, 128]
    b1 = jnp.concatenate([p["b1_v"], p["b1_a"]], axis=1)          # [1, 128]

    z = jnp.zeros((HIDDEN, HIDDEN), jnp.float32)
    w2 = jnp.block([[p["w2_v"], z], [z, p["w2_a"]]])              # [128, 128]
    b2 = jnp.concatenate([p["b2_v"], p["b2_a"]], axis=1)          # [1, 128]

    wh = jnp.zeros((PACK, PACK), jnp.float32)
    bh = jnp.zeros((1, PACK), jnp.float32)
    wh = wh.at[:HIDDEN, 0:1].set(p["w_val"])                      # value from value-branch
    bh = bh.at[:, 0:1].set(p["b_val"])
    if dist_type == "gauss":
        wh = wh.at[HIDDEN:, 1:1 + A].set(p["w_mean"])             # mean from action-branch
        bh = bh.at[:, 1:1 + A].set(p["b_mean"])
    else:
        wh = wh.at[HIDDEN:, 1:1 + A].set(p["w_alpha"])
        bh = bh.at[:, 1:1 + A].set(p["b_alpha"])
        wh = wh.at[HIDDEN:, 1 + A:1 + 2 * A].set(p["w_beta"])
        bh = bh.at[:, 1 + A:1 + 2 * A].set(p["b_beta"])

    b_pack = jnp.zeros((8, PACK), jnp.float32)
    b_pack = b_pack.at[0:1, :].set(b1)
    b_pack = b_pack.at[1:2, :].set(b2)
    b_pack = b_pack.at[2:3, :].set(bh)

    return {"w1": w1, "w2": w2, "wh": wh, "b": b_pack}


# ----------------------------- tiling -----------------------------------------


def _choose_tiling(B, target_tb=2048, small_b=256):
    """Adaptive batch tile: large tiles to amortize per-step overhead, an even
    number of >=2 grid steps for v7x megacore once B is non-trivial, and
    padding waste bounded by one step's rounding (<=7 rows + B/n_steps)."""
    if B <= small_b:
        TB = _round_up(max(B, 1), 8)
        return TB, _round_up(B, TB)
    n_steps = max(2, math.ceil(B / target_tb))
    if n_steps % 2:                     # even step count -> balanced across 2 TCs
        n_steps += 1
    TB = _round_up(math.ceil(B / n_steps), 8)
    return TB, _round_up(B, TB)


# ----------------------------- wrapper ----------------------------------------


@functools.partial(jax.jit, static_argnames=("dist_type", "num_actions"))
def mlp_net_forward(x, packed, sigma_log, dist_type, num_actions):
    B, S = x.shape
    A = num_actions

    TB, B_pad = _choose_tiling(B)
    if B_pad != B:
        x = jnp.pad(x, ((0, B_pad - B), (0, 0)))
    grid = (B_pad // TB,)

    kernel = functools.partial(
        _fused_mlp_kernel, num_actions=A, dist_type=dist_type)

    # Advisory cost for XLA scheduling around the custom call.
    weight_bytes = (S * PACK + 2 * PACK * PACK + 8 * PACK) * 4
    flops = 2 * B_pad * (S * PACK + 2 * PACK * PACK)
    transcendentals = B_pad * PACK * (3 if dist_type == "beta" else 2)
    bytes_accessed = B_pad * (S + PACK) * 4 + weight_bytes
    cost = pl.CostEstimate(flops=flops, transcendentals=transcendentals,
                           bytes_accessed=bytes_accessed)

    # Explicit scoped-VMEM budget: double-buffered x/slab tiles + resident
    # weights + headroom for the (TB,128) f32 intermediates.  >=32 MiB so big
    # tiles compile on v5e's 16 MiB default; capped below v7x's 64 MiB physical.
    tile_bytes = TB * (S + PACK) * 4
    scratch_bytes = 4 * TB * PACK * 4
    vmem_limit = int(min(56 * 2**20,
                         max(32 * 2**20,
                             2 * (2 * tile_bytes + weight_bytes + scratch_bytes))))

    slab = pl.pallas_call(
        kernel,
        out_shape=jax.ShapeDtypeStruct((B_pad, PACK), jnp.float32),
        grid_spec=pltpu.PrefetchScalarGridSpec(
            num_scalar_prefetch=0,
            grid=grid,
            in_specs=[
                pl.BlockSpec((TB, S), lambda i: (i, 0)),        # x tile
                pl.BlockSpec((S, PACK), lambda i: (0, 0)),      # W1_cat (resident)
                pl.BlockSpec((PACK, PACK), lambda i: (0, 0)),   # W2_blk
                pl.BlockSpec((PACK, PACK), lambda i: (0, 0)),   # W_head
                pl.BlockSpec((8, PACK), lambda i: (0, 0)),      # packed biases
            ],
            out_specs=pl.BlockSpec((TB, PACK), lambda i: (i, 0)),  # lane-dense slab
        ),
        compiler_params=pltpu.CompilerParams(
            dimension_semantics=("parallel",),
            vmem_limit_bytes=vmem_limit),
        cost_estimate=cost,
    )(x, packed["w1"], packed["w2"], packed["wh"], packed["b"])

    # TODO(synk): downstream PPO consumers could read the packed slab directly
    # (or take a bf16 slab) to avoid a second full HBM pass over B*512 B.
    slab = slab[:B]
    value = slab[:, 0:1]
    if dist_type == "gauss":
        mean = slab[:, 1:1 + A]
        # sigma = exp(sigma_log) is batch-invariant: computed once here.
        sigma = jnp.broadcast_to(jnp.exp(sigma_log), mean.shape)
        return value, (mean, sigma)
    else:
        alpha = slab[:, 1:1 + A]
        beta = slab[:, 1 + A:1 + 2 * A]
        return value, (alpha, beta)


# ----------------------------- reference --------------------------------------


def mlp_net_reference(x, params, dist_type):
    hp = jax.lax.Precision.HIGHEST
    xv = jnp.tanh(jnp.dot(x, params["w1_v"], precision=hp) + params["b1_v"])
    xv = jnp.tanh(jnp.dot(xv, params["w2_v"], precision=hp) + params["b2_v"])
    value = jnp.dot(xv, params["w_val"], precision=hp) + params["b_val"]
    xa = jnp.tanh(jnp.dot(x, params["w1_a"], precision=hp) + params["b1_a"])
    xa = jnp.tanh(jnp.dot(xa, params["w2_a"], precision=hp) + params["b2_a"])
    if dist_type == "gauss":
        mean = jnp.dot(xa, params["w_mean"], precision=hp) + params["b_mean"]
        sigma = jnp.exp(jnp.broadcast_to(params["sigma_log"], mean.shape))
        return value, (mean, sigma)
    else:
        alpha = jax.nn.softplus(
            jnp.dot(xa, params["w_alpha"], precision=hp) + params["b_alpha"]) + 1.0
        beta = jax.nn.softplus(
            jnp.dot(xa, params["w_beta"], precision=hp) + params["b_beta"]) + 1.0
        return value, (alpha, beta)


# ----------------------------- main --------------------------------------------


if __name__ == "__main__":
    key = jax.random.PRNGKey(0)
    state_size, num_actions = 32, 4
    kx, kp_g, kp_b = jax.random.split(key, 3)

    ok = True
    # batch=8: single-tile path; batch=388: multi-step grid + zero-padding path.
    for batch in (8, 388):
        x = jax.random.normal(kx, (batch, state_size), jnp.float32)
        for dist_type, kp in (("gauss", kp_g), ("beta", kp_b)):
            params = init_params(kp, state_size, num_actions, dist_type)
            packed = pack_params(params, num_actions, dist_type)
            sigma_log = params.get("sigma_log", None)

            value, (p0, p1) = mlp_net_forward(x, packed, sigma_log,
                                              dist_type, num_actions)
            jax.block_until_ready((value, p0, p1))

            rv, (r0, r1) = mlp_net_reference(x, params, dist_type)
            ok &= bool(jnp.allclose(value, rv, atol=2e-5))
            ok &= bool(jnp.allclose(p0, r0, atol=2e-5))
            ok &= bool(jnp.allclose(p1, r1, atol=2e-5))

    if ok:
        print("KERNEL_OK")
    else:
        print("MISMATCH")
</pallas_src>

<mosaic_0001>
module attributes {stable_mosaic.version = 11 : i64} {
  func.func @_fused_mlp_kernel(%arg0: i32, %arg1: memref<8x32xf32, #tpu.memory_space<vmem>>, %arg2: memref<32x128xf32, #tpu.memory_space<vmem>>, %arg3: memref<128x128xf32, #tpu.memory_space<vmem>>, %arg4: memref<128x128xf32, #tpu.memory_space<vmem>>, %arg5: memref<8x128xf32, #tpu.memory_space<vmem>>, %arg6: memref<8x128xf32, #tpu.memory_space<vmem>>) attributes {dimension_semantics = [#tpu.dimension_semantics<parallel>], iteration_bounds = array<i64: 1>, scalar_prefetch = 0 : i64, scratch_operands = 0 : i64, tpu.core_type = #tpu.core_type<tc>, window_params = [{transform_indices = @transform_0, window_bounds = array<i64: 8, 32>}, {pipeline_mode = #tpu.pipeline_mode<synchronous>, transform_indices = @transform_1, window_bounds = array<i64: 32, 128>}, {pipeline_mode = #tpu.pipeline_mode<synchronous>, transform_indices = @transform_2, window_bounds = array<i64: 128, 128>}, {pipeline_mode = #tpu.pipeline_mode<synchronous>, transform_indices = @transform_3, window_bounds = array<i64: 128, 128>}, {pipeline_mode = #tpu.pipeline_mode<synchronous>, transform_indices = @transform_4, window_bounds = array<i64: 8, 128>}, {transform_indices = @transform_5, window_bounds = array<i64: 8, 128>}]} {
    %c0 = arith.constant 0 : index
    %c0_0 = arith.constant 0 : index
    %0 = vector.load %arg1[%c0, %c0_0] : memref<8x32xf32, #tpu.memory_space<vmem>>, vector<8x32xf32>
    %c0_1 = arith.constant 0 : index
    %c0_2 = arith.constant 0 : index
    %1 = vector.load %arg5[%c0_1, %c0_2] : memref<8x128xf32, #tpu.memory_space<vmem>>, vector<1x128xf32>
    %c1 = arith.constant 1 : index
    %c0_3 = arith.constant 0 : index
    %2 = vector.load %arg5[%c1, %c0_3] : memref<8x128xf32, #tpu.memory_space<vmem>>, vector<1x128xf32>
    %c2 = arith.constant 2 : index
    %c0_4 = arith.constant 0 : index
    %3 = vector.load %arg5[%c2, %c0_4] : memref<8x128xf32, #tpu.memory_space<vmem>>, vector<1x128xf32>
    %c0_5 = arith.constant 0 : index
    %c0_6 = arith.constant 0 : index
    %4 = vector.load %arg2[%c0_5, %c0_6] : memref<32x128xf32, #tpu.memory_space<vmem>>, vector<32x128xf32>
    %cst = arith.constant dense<0.000000e+00> : vector<8x128xf32>
    %5 = tpu.matmul %0, %4, %cst {dimension_numbers = #tpu.dot_dimension_numbers<[1], [0], [0], [1], [0, 0, 1, 1], [], []>} : vector<8x32xf32>, vector<32x128xf32>, vector<8x128xf32> -> vector<8x128xf32>
    %6 = vector.broadcast %1 : vector<1x128xf32> to vector<8x128xf32>
    %7 = arith.addf %5, %6 : vector<8x128xf32>
    %8 = math.tanh %7 : vector<8x128xf32>
    %c0_7 = arith.constant 0 : index
    %c0_8 = arith.constant 0 : index
    %9 = vector.load %arg3[%c0_7, %c0_8] : memref<128x128xf32, #tpu.memory_space<vmem>>, vector<128x128xf32>
    %cst_9 = arith.constant dense<0.000000e+00> : vector<8x128xf32>
    %10 = tpu.matmul %8, %9, %cst_9 {dimension_numbers = #tpu.dot_dimension_numbers<[1], [0], [0], [1], [0, 0, 1, 1], [], []>} : vector<8x128xf32>, vector<128x128xf32>, vector<8x128xf32> -> vector<8x128xf32>
    %11 = vector.broadcast %2 : vector<1x128xf32> to vector<8x128xf32>
    %12 = arith.addf %10, %11 : vector<8x128xf32>
    %13 = math.tanh %12 : vector<8x128xf32>
    %c0_10 = arith.constant 0 : index
    %c0_11 = arith.constant 0 : index
    %14 = vector.load %arg4[%c0_10, %c0_11] : memref<128x128xf32, #tpu.memory_space<vmem>>, vector<128x128xf32>
    %cst_12 = arith.constant dense<0.000000e+00> : vector<8x128xf32>
    %15 = tpu.matmul %13, %14, %cst_12 {dimension_numbers = #tpu.dot_dimension_numbers<[1], [0], [0], [1], [0, 0, 1, 1], [], []>} : vector<8x128xf32>, vector<128x128xf32>, vector<8x128xf32> -> vector<8x128xf32>
    %16 = vector.broadcast %3 : vector<1x128xf32> to vector<8x128xf32>
    %17 = arith.addf %15, %16 : vector<8x128xf32>
    %c0_13 = arith.constant 0 : index
    %c0_14 = arith.constant 0 : index
    %18 = vector.load %arg6[%c0_13, %c0_14] : memref<8x128xf32, #tpu.memory_space<vmem>>, vector<8x128xf32>
    tpu.vector_store %arg6[%c0_13, %c0_14], %17 {strides = array<i32>} : memref<8x128xf32, #tpu.memory_space<vmem>>, vector<8x128xf32>,
    return
  }
  func.func @transform_0(%arg0: i32) -> (i32, i32) {
    %c0_i32 = arith.constant 0 : i32
    %c0_i32_0 = arith.constant 0 : i32
    return %arg0, %c0_i32 : i32, i32
  }
  func.func @transform_1(%arg0: i32) -> (i32, i32) {
    %c0_i32 = arith.constant 0 : i32
    %c0_i32_0 = arith.constant 0 : i32
    %c0_i32_1 = arith.constant 0 : i32
    return %c0_i32, %c0_i32_0 : i32, i32
  }
  func.func @transform_2(%arg0: i32) -> (i32, i32) {
    %c0_i32 = arith.constant 0 : i32
    %c0_i32_0 = arith.constant 0 : i32
    %c0_i32_1 = arith.constant 0 : i32
    return %c0_i32, %c0_i32_0 : i32, i32
  }
  func.func @transform_3(%arg0: i32) -> (i32, i32) {
    %c0_i32 = arith.constant 0 : i32
    %c0_i32_0 = arith.constant 0 : i32
    %c0_i32_1 = arith.constant 0 : i32
    return %c0_i32, %c0_i32_0 : i32, i32
  }
  func.func @transform_4(%arg0: i32) -> (i32, i32) {
    %c0_i32 = arith.constant 0 : i32
    %c0_i32_0 = arith.constant 0 : i32
    %c0_i32_1 = arith.constant 0 : i32
    return %c0_i32, %c0_i32_0 : i32, i32
  }
  func.func @transform_5(%arg0: i32) -> (i32, i32) {
    %c0_i32 = arith.constant 0 : i32
    %c0_i32_0 = arith.constant 0 : i32
    return %arg0, %c0_i32 : i32, i32
  }
}

</mosaic_0001>

<bundles_post_ra>
// kernel: mlp_net_forward.1
= control target key start
LH: loop header
LB: loop body
LE: loop exit
PB: predicated region body
PF: predicated region fallthrough
CT: control target
= control target key end

     0   :  { %10 = vsyncpa [#allocation3], 0  ;;  %s764_s0 = inlined_call_operand.vmem [shape: f32[8,32], index: 0, kind: input, shape index: {}]   ;;  %s765_s1 = inlined_call_operand.hbm [shape: f32[32,128], index: 1, kind: input, shape index: {}]   ;;  %s766_s2 = inlined_call_operand.hbm [shape: f32[128,128], index: 2, kind: input, shape index: {}]   ;;  %s767_s3 = inlined_call_operand.hbm [shape: f32[128,128], index: 3, kind: input, shape index: {}]   ;;  %s768_s4 = inlined_call_operand.hbm [shape: f32[8,128], index: 4, kind: input, shape index: {}]   ;;  %s769_s5 = inlined_call_operand.vmem [shape: f32[8,128], index: 5, kind: output, shape index: {}]  }
   0x1   :  { %11 = vsyncpa [#allocation5], 0 }
   0x2   :  { %12 = vsyncpa [#allocation8], 0  ;;  %s634_s18 = smov [#allocation4]   ;;  %s635_s20 = smov [#allocation2]  }
   0x3   :  { %s32_s19 = sshll.u32 %s634_s18, 4  ;;  %s20_s21 = sshll.u32 %s635_s20, 4  ;;  %s33_s19 = int_to_ptr.vmem [resolvable:$true] %s32_s19  ;;  %s673_s21 = int_to_ptr.vmem [resolvable:$true] %s20_s21 }
   0x4   :  { %s540_s24 = scalar_lea.hbm %s766_s2, 2048 }
   0x5   :  { %p541_p0 = scmp.ne.s32.totalorder %s766_s2, %s540_s24  ;;  %p544_p1 = scmp.lt.u32.totalorder %s540_s24, %s766_s2 }
   0x7   :  { %p546_p2 = pnand %p544_p1, %p541_p0 }
   0x9   :  { %549 = shalt.err (!%p546_p2)
}
   0xa   :  { %s550_s29 = scalar_lea.vmem %s33_s19, 2048  ;;  %p555_p4 = scmp.lt.s32.totalorder %s33_s19, %s33_s19 }
   0xb   :  { %p551_p3 = scmp.ne.s32.totalorder %s33_s19, %s550_s29  ;;  %p556_p5 = scmp.lt.s32.totalorder %s550_s29, %s550_s29 }
   0xd   :  { %p557_p6 = por %p556_p5, %p555_p4 }
   0xf   :  { %p558_p7 = pnand %p557_p6, %p551_p3 }
  0x11   :  { %561 = shalt.err (!%p558_p7)
}
  0x12   :  { %s636_s30 = smov 128   ;;  %s637_s6 = smov 8  }
  0x13   :  { %38 = dma.hbm_to_vmem [thread:$0]  %s766_s2, 2048, %s33_s19, [#allocation5], %s636_s30, %s636_s30, %s637_s6  }
  0x14   :  { %s562_s11 = scalar_lea.hbm %s765_s1, 512 }
  0x15   :  { %p563_p8 = scmp.ne.s32.totalorder %s765_s1, %s562_s11  ;;  %p566_p9 = scmp.lt.u32.totalorder %s562_s11, %s765_s1 }
  0x17   :  { %p568_p10 = pnand %p566_p9, %p563_p8 }
  0x19   :  { %571 = shalt.err (!%p568_p10)
}
  0x1a   :  { %s572_s16 = scalar_lea.vmem %s673_s21, 512  ;;  %p577_p12 = scmp.lt.s32.totalorder %s673_s21, %s673_s21 }
  0x1b   :  { %p573_p11 = scmp.ne.s32.totalorder %s673_s21, %s572_s16  ;;  %p578_p13 = scmp.lt.s32.totalorder %s572_s16, %s572_s16 }
  0x1d   :  { %p579_p0 = por %p578_p13, %p577_p12 }
  0x1f   :  { %p580_p1 = pnand %p579_p0, %p573_p11 }
  0x21   :  { %583 = shalt.err (!%p580_p1)
}
  0x22   :  { %26 = dma.hbm_to_vmem [thread:$0]  %s765_s1, 512, %s673_s21, [#allocation3], %s636_s30, %s636_s30, %s637_s6  }
  0x23   :  { %s638_s18 = smov [#allocation6]   ;;  %s639_s20 = smov [#allocation7]  }
  0x24   :  { %s44_s19 = sshll.u32 %s638_s18, 4  ;;  %s57_s22 = sshll.u32 %s639_s20, 4  ;;  %s45_s19 = int_to_ptr.vmem [resolvable:$true] %s44_s19  ;;  %s58_s22 = int_to_ptr.vmem [resolvable:$true] %s57_s22 }
  0x25   :  { %s584_s25 = scalar_lea.hbm %s767_s3, 2048 }
  0x26   :  { %p585_p2 = scmp.ne.s32.totalorder %s767_s3, %s584_s25  ;;  %p588_p3 = scmp.lt.u32.totalorder %s584_s25, %s767_s3 }
  0x28   :  { %p590_p4 = pnand %p588_p3, %p585_p2 }
  0x2a   :  { %593 = shalt.err (!%p590_p4)
}
  0x2b   :  { %s594_s1 = scalar_lea.vmem %s45_s19, 2048  ;;  %p599_p6 = scmp.lt.s32.totalorder %s45_s19, %s45_s19 }
  0x2c   :  { %p595_p5 = scmp.ne.s32.totalorder %s45_s19, %s594_s1  ;;  %p600_p7 = scmp.lt.s32.totalorder %s594_s1, %s594_s1 }
  0x2e   :  { %p601_p8 = por %p600_p7, %p599_p6 }
  0x30   :  { %p602_p9 = pnand %p601_p8, %p595_p5 }
  0x32   :  { %605 = shalt.err (!%p602_p9)
}
  0x33   :  { %50 = dma.hbm_to_vmem [thread:$0]  %s767_s3, 2048, %s45_s19, [#allocation5], %s636_s30, %s636_s30, %s637_s6  }
  0x34   :  { %s606_s10 = scalar_lea.hbm %s768_s4, 128 }
  0x35   :  { %p607_p10 = scmp.ne.s32.totalorder %s768_s4, %s606_s10  ;;  %p610_p11 = scmp.lt.u32.totalorder %s606_s10, %s768_s4 }
  0x37   :  { %p612_p12 = pnand %p610_p11, %p607_p10 }
  0x39   :  { %615 = shalt.err (!%p612_p12)
}
  0x3a   :  { %s616_s15 = scalar_lea.vmem %s58_s22, 128  ;;  %p621_p0 = scmp.lt.s32.totalorder %s58_s22, %s58_s22 }
  0x3b   :  { %p617_p13 = scmp.ne.s32.totalorder %s58_s22, %s616_s15  ;;  %p622_p1 = scmp.lt.s32.totalorder %s616_s15, %s616_s15 }
  0x3d   :  { %p623_p2 = por %p622_p1, %p621_p0 }
  0x3f   :  { %p624_p3 = pnand %p623_p2, %p617_p13 }
  0x41   :  { %627 = shalt.err (!%p624_p3)
}
  0x42   :  { %60 = dma.hbm_to_vmem [thread:$0]  %s768_s4, 128, %s58_s22, [#allocation8]  }
  0x43   :  { %628 = dma.done.wait [#allocation3], 512  }
  0x44   :  { %629 = vsyncadd [#allocation3], 4294966784 }
  0x45   :  { %630 = dma.done.wait [#allocation5], 4096  }
  0x46   :  { %631 = vsyncadd [#allocation5], 4294963200 }
  0x47   :  { %632 = dma.done.wait [#allocation8], 128  }
  0x48   :  { %633 = vsyncadd [#allocation8], 4294967168  ;;  %v640_v0 = vmov 0.0|0.0   ;;  %vm641_vm0 = vmmov 0   ;;  %v642_v1 = vmov 0.0   ;;  %v77_v2 = vld [vmem:[#allocation2] sm:$0xff] }
  0x49   :  { %473 = vmatprep.subr.bf16.mxu0 %v640_v0  ;;  %400 = vmatprep.mubr.msk.f32.mxu0 %vm641_vm0, %v642_v1  ;;  %v78_v3 = vld [vmem:[#allocation2 + $0x8] sm:$0xff]  ;;  %v79_v4 = vld [vmem:[#allocation2 + $0x10] sm:$0xff]  ;;  %v80_v6 = vld [vmem:[#allocation2 + $0x18] sm:$0xff]  ;;  %vm85_vm1 = vcmask 261120  }
  0x4a   :  { %479 = vmatprep.subr.bf16.mxu1 %v640_v0  ;;  %435 = vmatprep.mubr.msk.f32.mxu1 %vm641_vm0, %v642_v1  ;;  %v474_v5 = vpack.c.bf16 %v78_v3, %v77_v2  ;;  %v160_v7 = vld [vmem:[#allocation4] sm:$0xff]  ;;  %v161_v8 = vld [vmem:[#allocation4 + $0x8] sm:$0xff]  ;;  %v162_v9 = vld [vmem:[#allocation4 + $0x10] sm:$0xff]  ;;  %v477_v11 = vpack.c.bf16 %v80_v6, %v79_v4 }
  0x4b   :  { %v163_v10 = vld [vmem:[#allocation4 + $0x18] sm:$0xff]  ;;  %v480_v12 = vpack.c.bf16 %v161_v8, %v160_v7  ;;  %v164_v14 = vld [vmem:[#allocation4 + $0x20] sm:$0xff]  ;;  %v165_v15 = vld [vmem:[#allocation4 + $0x28] sm:$0xff] }
  0x4c   :  { %475 = vmatpush3.bf16.msra.mxu0 %v474_v5  ;;  %v483_v13 = vpack.c.bf16 %v163_v10, %v162_v9  ;;  %v73_v16 = vld [vmem:[%s764_s0] sm:$0xff]  ;;  %v486_v17 = vpack.c.bf16 %v165_v15, %v164_v14  ;;  %v166_v18 = vld [vmem:[#allocation4 + $0x30] sm:$0xff]  ;;  %v167_v19 = vld [vmem:[#allocation4 + $0x38] sm:$0xff] }
  0x4d   :  { %476 = vmatprep.subr.bf16.mxu0 %v640_v0  ;;  %481 = vmatpush3.bf16.msra.mxu1 %v480_v12  ;;  %v489_v20 = vpack.c.bf16 %v167_v19, %v166_v18  ;;  %v168_v21 = vld [vmem:[#allocation4 + $0x40] sm:$0xff]  ;;  %v169_v22 = vld [vmem:[#allocation4 + $0x48] sm:$0xff]  ;;  %v170_v24 = vld [vmem:[#allocation4 + $0x50] sm:$0xff] }
  0x4e   :  { %482 = vmatprep.subr.bf16.mxu1 %v640_v0  ;;  %v492_v23 = vpack.c.bf16 %v169_v22, %v168_v21  ;;  %v171_v25 = vld [vmem:[#allocation4 + $0x58] sm:$0xff]  ;;  %v172_v27 = vld [vmem:[#allocation4 + $0x60] sm:$0xff]  ;;  %v173_v28 = vld [vmem:[#allocation4 + $0x68] sm:$0xff] }
  0x4f   :  { %v495_v26 = vpack.c.bf16 %v171_v25, %v170_v24  ;;  %v498_v29 = vpack.c.bf16 %v173_v28, %v172_v27  ;;  %v174_v30 = vld [vmem:[#allocation4 + $0x70] sm:$0xff]  ;;  %v175_v31 = vld [vmem:[#allocation4 + $0x78] sm:$0xff]  ;;  %v251_v33 = vld [vmem:[#allocation6] sm:$0xff] }
  0x50   :  { %478 = vmatpush3.bf16.msra.mxu0 %v477_v11  ;;  %v501_v32 = vpack.c.bf16 %v175_v31, %v174_v30  ;;  %v252_v34 = vld [vmem:[#allocation6 + $0x8] sm:$0xff]  ;;  %v253_v35 = vld [vmem:[#allocation6 + $0x10] sm:$0xff]  ;;  %v254_v37 = vld [vmem:[#allocation6 + $0x18] sm:$0xff] }
  0x51   :  { %503 = vmatprep.subr.bf16.mxu0 %v640_v0  ;;  %484 = vmatpush3.bf16.msra.mxu1 %v483_v13  ;;  %v504_v36 = vpack.c.bf16 %v252_v34, %v251_v33  ;;  %v507_v38 = vpack.c.bf16 %v254_v37, %v253_v35  ;;  %v255_v39 = vld [vmem:[#allocation6 + $0x20] sm:$0xff]  ;;  %v256_v40 = vld [vmem:[#allocation6 + $0x28] sm:$0xff]  ;;  %v257_v42 = vld [vmem:[#allocation6 + $0x30] sm:$0xff] }
  0x52   :  { %485 = vmatprep.subr.bf16.mxu1 %v640_v0  ;;  %v510_v41 = vpack.c.bf16 %v256_v40, %v255_v39  ;;  %v258_v43 = vld [vmem:[#allocation6 + $0x38] sm:$0xff]  ;;  %v259_v45 = vld [vmem:[#allocation6 + $0x40] sm:$0xff]  ;;  %v260_v46 = vld [vmem:[#allocation6 + $0x48] sm:$0xff] }
  0x53   :  { %401 = vmatmul.mubr.msk.f32.vlgmr.msra.gmra.mrb[0].mxu0 %vm85_vm1, %v73_v16  ;;  %v513_v44 = vpack.c.bf16 %v258_v43, %v257_v42  ;;  %v516_v47 = vpack.c.bf16 %v260_v46, %v259_v45  ;;  %v349_v48 = vld [vmem:[#allocation7] ss:$0 sm:$0xff]  ;;  %v261_v53 = vld [vmem:[#allocation6 + $0x50] sm:$0xff]  ;;  %v262_v54 = vld [vmem:[#allocation6 + $0x58] sm:$0xff] }
  0x54   :  { %470 = vmatprep.mubr.msk.f32.mxu0 %vm641_vm0, %v642_v1  ;;  %505 = vmatpush3.bf16.msra.mxu0 %v504_v36  ;;  %v519_v55 = vpack.c.bf16 %v262_v54, %v261_v53  ;;  %v263_v56 = vld [vmem:[#allocation6 + $0x60] sm:$0xff]  ;;  %v264_v57 = vld [vmem:[#allocation6 + $0x68] sm:$0xff]  ;;  %v265_v59 = vld [vmem:[#allocation6 + $0x70] sm:$0xff] }
  0x55   :  { %487 = vmatpush3.bf16.msra.mxu1 %v486_v17  ;;  %506 = vmatprep.subr.bf16.mxu0 %v640_v0  ;;  %v522_v58 = vpack.c.bf16 %v264_v57, %v263_v56  ;;  %v266_v60 = vld [vmem:[#allocation6 + $0x78] sm:$0xff]  ;;  %v351_v62 = vld [vmem:[#allocation7 + $0x1] ss:$0 sm:$0xff]  ;;  %v352_v4 = vld [vmem:[#allocation7 + $0x2] ss:$0 sm:$0xff] }
  0x56   :  { %488 = vmatprep.subr.bf16.mxu1 %v640_v0  ;;  %v525_v61 = vpack.c.bf16 %v266_v60, %v265_v59 }
  0x58   :  { %508 = vmatpush3.bf16.msra.mxu0 %v507_v38 }
  0x59   :  { %490 = vmatpush3.bf16.msra.mxu1 %v489_v20  ;;  %509 = vmatprep.subr.bf16.mxu0 %v640_v0 }
  0x5a   :  { %491 = vmatprep.subr.bf16.mxu1 %v640_v0 }
  0x5c   :  { %511 = vmatpush3.bf16.msra.mxu0 %v510_v41 }
  0x5d   :  { %493 = vmatpush3.bf16.msra.mxu1 %v492_v23  ;;  %512 = vmatprep.subr.bf16.mxu0 %v640_v0 }
  0x5e   :  { %494 = vmatprep.subr.bf16.mxu1 %v640_v0 }
  0x60   :  { %514 = vmatpush3.bf16.msra.mxu0 %v513_v44 }
  0x61   :  { %496 = vmatpush3.bf16.msra.mxu1 %v495_v26  ;;  %515 = vmatprep.subr.bf16.mxu0 %v640_v0 }
  0x62   :  { %497 = vmatprep.subr.bf16.mxu1 %v640_v0 }
  0x64   :  { %517 = vmatpush3.bf16.msra.mxu0 %v516_v47 }
  0x65   :  { %499 = vmatpush3.bf16.msra.mxu1 %v498_v29  ;;  %518 = vmatprep.subr.bf16.mxu0 %v640_v0 }
  0x66   :  { %500 = vmatprep.subr.bf16.mxu1 %v640_v0 }
  0x68   :  { %520 = vmatpush3.bf16.msra.mxu0 %v519_v55 }
  0x69   :  { %502 = vmatpush3.bf16.msra.mxu1 %v501_v32  ;;  %521 = vmatprep.subr.bf16.mxu0 %v640_v0 }
  0x6c   :  { %523 = vmatpush3.bf16.msra.mxu0 %v522_v58 }
  0x6d   :  { %524 = vmatprep.subr.bf16.mxu0 %v640_v0 }
  0x70   :  { %526 = vmatpush3.bf16.msra.mxu0 %v525_v61 }
 0x126   :  { %v155_v49 = vpop.f32.mrb[0].mxu0 }
 0x127   :  { %v156_v50 = vadd.f32 %v349_v48, %v155_v49  ;;  %v402_v51 = vpop.f32.mrb[1].mxu0 }
 0x129   :  { %536 = vtanh.f32 %v156_v50 }
 0x133   :  { %v537_v52 = vpop.eup %536 }
 0x134   :  { %436 = vmatmul.mubr.f32.vlgmr.msra.gmra.mrb[0].mxu1 %v537_v52 }
 0x207   :  { %v246_v63 = vpop.f32.mrb[0].mxu1 }
 0x208   :  { %v247_v1 = vadd.f32 %v351_v62, %v246_v63  ;;  %v437_v2 = vpop.f32.mrb[1].mxu1 }
 0x20a   :  { %538 = vtanh.f32 %v247_v1 }
 0x214   :  { %v539_v3 = vpop.eup %538 }
 0x215   :  { %471 = vmatmul.mubr.f32.vlgmr.msra.gmra.mrb[2].mxu0 %v539_v3 }
 0x2e8   :  { %v337_v5 = vpop.f32.mrb[2].mxu0 }
 0x2e9   :  { %v338_v6 = vadd.f32 %v352_v4, %v337_v5  ;;  %v472_v7 = vpop.f32.mrb[3].mxu0 }
 0x2eb   :  { %341 = vst [vmem:[%s769_s5] sm:$0xff] %v338_v6 }
 0x2ec   :  { %346 = vsyncpa [#allocation3], 1 }
 0x2ed   :  { %347 = vsyncpa [#allocation5], 1 }
 0x2ee   :  { %348 = vsyncpa [#allocation8], 1 }

</bundles_post_ra>
